<compile_context>
chip_gen: v7x
topology: tpu7x:2x2x1
jax: 0.10.0
libtpu: 0.0.40
codegen_flags: <defaults>
</compile_context>

<pallas_src>
import math
from functools import partial

import jax
import jax.numpy as jnp
from jax import lax
from jax.experimental import pallas as pl
from jax.experimental.pallas import tpu as pltpu


def _round_up(v, m):
    return (v + m - 1) // m * m


def _attn_pool_kernel(
    x_ref, wp_ref, bp_ref, wq_ref,          # inputs
    m_ref, l_ref, acc_ref,                   # outputs (resident accumulators per split)
    *, tile_m, tiles_per_split, m_total, apply_mask, f32_silu):
    c = pl.program_id(0)      # split index ("parallel" -> sharded across TCs on v7x)
    j = pl.program_id(1)      # key-tile index within the split ("arbitrary" reduction)

    @pl.when(j == 0)
    def _init():
        m_ref[...] = jnp.full(m_ref.shape, -jnp.inf, dtype=jnp.float32)
        l_ref[...] = jnp.zeros(l_ref.shape, dtype=jnp.float32)
        acc_ref[...] = jnp.zeros(acc_ref.shape, dtype=jnp.float32)

    mm_dtype = wp_ref.dtype

    # --- proj: SiLU then Linear(in_features -> dim, bias=True) ---
    x = x_ref[...]
    if f32_silu:
        x = x.astype(jnp.float32)          # f32 VPU path (required on v5e for bf16 inputs)
    act = x * jax.nn.sigmoid(x)            # SiLU
    h = jnp.dot(act.astype(mm_dtype), wp_ref[...],
                preferred_element_type=jnp.float32)
    h = h + bp_ref[...].astype(jnp.float32)               # (TM, dim) f32
    hc = h.astype(mm_dtype)

    # --- scores for all (head, query) effective rows in one MXU matmul: (HQ, TM) ---
    # wq_ref already has W_k and the 1/sqrt(head_dim) scale folded in.
    s = lax.dot_general(wq_ref[...], hc, (((1,), (1,)), ((), ())),
                        preferred_element_type=jnp.float32)

    # --- online softmax over the key axis (flash-style) ---
    m_prev = m_ref[0]                                      # (HQ, 1)
    m_new = jnp.maximum(m_prev, jnp.max(s, axis=-1, keepdims=True))
    alpha = jnp.exp(m_prev - m_new)
    p = jnp.exp(s - m_new)                                 # (HQ, TM)
    if apply_mask:
        # Ragged tail: zero the padded-key probabilities (no -1e30 score constant).
        key_idx = (c * tiles_per_split + j) * tile_m + lax.broadcasted_iota(
            jnp.int32, (1, tile_m), 1)
        p = jnp.where(key_idx < m_total, p, 0.0)
    l_ref[0] = alpha * l_ref[0] + jnp.sum(p, axis=-1, keepdims=True)
    # W_v deferred to the epilogue: accumulate un-projected context p @ h.
    acc_ref[0] = alpha * acc_ref[0] + jnp.dot(
        p.astype(mm_dtype), hc, preferred_element_type=jnp.float32)
    m_ref[0] = m_new


def attention_pooling_classifier(x, params, *, num_heads, tile_m=None,
                                 num_splits=None, f32_silu=None):
    """x: (B0, N0, in_features). Returns (1, out_features) like the torch module.

    Weights follow the "x @ W" convention: w_proj (Fin, dim), w_k/w_v (dim, dim),
    cls_token (num_queries, dim), w_out (dim, out_features).  Pass bf16 params/x for
    bf16 MXU operands (f32 accumulation) on v6e/v7x; softmax math stays f32.
    """
    B0, N0, Fin = x.shape
    M = B0 * N0
    x_flat = x.reshape(M, Fin)

    wp = params["w_proj"]
    bp = params["b_proj"]
    wk = params["w_k"]
    wv = params["w_v"]
    cls = params["cls_token"]
    wo = params["w_out"]

    dim = wp.shape[1]
    out_features = wo.shape[1]
    Q = cls.shape[0]
    H = num_heads
    hd = dim // H
    HQ = H * Q
    mm_dtype = wp.dtype

    if f32_silu is None:
        # bf16 SiLU on bf16 inputs (bf16 VPU/EUP on v6e/v7x); f32 otherwise.
        # Pass f32_silu=True explicitly for bf16 inputs on v5e (no bf16 VALU/EUP).
        f32_silu = (x.dtype == jnp.float32)

    # --- Opt #1: fold W_k and the attention scale into the class-token queries ---
    #   wq_eff[(h,q), c] = (1/sqrt(hd)) * sum_d W_k[c, h*hd + d] * cls[q, h*hd + d]
    scale = 1.0 / math.sqrt(hd)
    wq_eff = (scale * jnp.einsum(
        'chd,qhd->hqc',
        wk.reshape(dim, H, hd).astype(jnp.float32),
        cls.reshape(Q, H, hd).astype(jnp.float32))).reshape(HQ, dim).astype(mm_dtype)

    # --- per-generation VMEM budget (opt #6) ---
    try:
        vmem_cap = int(pltpu.get_tpu_info().vmem_capacity_bytes)
    except Exception:
        vmem_cap = 128 << 20
    vmem_cap_usable = int(vmem_cap * 0.85)      # leave headroom (matters most on v7x 64MiB)

    x_b = jnp.dtype(x_flat.dtype).itemsize
    w_b = jnp.dtype(mm_dtype).itemsize

    def vmem_estimate(tm_):
        est = 2 * tm_ * Fin * x_b                          # streamed x tile, double-buffered
        est += 2 * (Fin * dim + dim + HQ * dim) * w_b      # resident wp / bp / wq_eff (2x bufs)
        est += 2 * (2 * HQ + HQ * dim) * 4                 # resident m/l/acc output blocks (2x)
        est += tm_ * Fin * ((4 if f32_silu else x_b) + w_b)  # SiLU temp + MXU cast
        est += tm_ * dim * (4 + w_b)                       # h (f32) + hc cast
        est += 2 * HQ * tm_ * 4                            # s and p (f32)
        return int(est * 1.25) + (2 << 20)

    # --- tile size (opt #7): MXU-friendly multiples of 256, largest that fits ---
    if tile_m is None:
        tm = 256
        for cand in (2048, 1792, 1536, 1280, 1024, 768, 512, 256):
            if vmem_estimate(cand) <= vmem_cap_usable:
                tm = cand
                break
        if M <= tm:
            tm = _round_up(M, 8)           # single tile covering all keys
    else:
        tm = min(_round_up(tile_m, 8), _round_up(M, 8))

    grid_m = pl.cdiv(M, tm)
    if num_splits is None:
        # Opt #3: 2-way split of the key axis on a "parallel" grid axis (v7x dual-TC);
        # sequential (and essentially free) on single-TC v5e/v6e.
        num_splits = 2 if grid_m >= 2 else 1
    n_split = max(1, min(num_splits, grid_m))
    tiles_per_split = pl.cdiv(grid_m, n_split)
    total_tiles = n_split * tiles_per_split
    m_pad = total_tiles * tm
    if m_pad != M:
        x_flat = jnp.pad(x_flat, ((0, m_pad - M), (0, 0)))
    apply_mask = (m_pad != M)

    vmem_limit = int(min(max(vmem_estimate(tm), 16 << 20), vmem_cap_usable))

    kernel = partial(_attn_pool_kernel,
                     tile_m=tm, tiles_per_split=tiles_per_split, m_total=M,
                     apply_mask=apply_mask, f32_silu=f32_silu)

    def resident(shape):
        # Constant block index -> stays VMEM-resident across the whole grid.
        # TODO(synk): pipeline_mode=pl.Buffered(1) here would halve the resident footprint.
        n = len(shape)
        return pl.BlockSpec(shape, lambda c, j, _n=n: (0,) * _n)

    grid_spec = pltpu.PrefetchScalarGridSpec(
        num_scalar_prefetch=0,
        grid=(n_split, tiles_per_split),
        in_specs=[
            pl.BlockSpec((tm, Fin), lambda c, j: (c * tiles_per_split + j, 0)),  # streamed x
            resident(wp.shape),
            resident(bp.shape),
            resident(wq_eff.shape),
        ],
        out_specs=[
            pl.BlockSpec((1, HQ, 1), lambda c, j: (c, 0, 0)),     # m  (per split)
            pl.BlockSpec((1, HQ, 1), lambda c, j: (c, 0, 0)),     # l  (per split)
            pl.BlockSpec((1, HQ, dim), lambda c, j: (c, 0, 0)),   # acc (per split)
        ],
    )

    m_parts, l_parts, acc_parts = pl.pallas_call(
        kernel,
        out_shape=(
            jax.ShapeDtypeStruct((n_split, HQ, 1), jnp.float32),
            jax.ShapeDtypeStruct((n_split, HQ, 1), jnp.float32),
            jax.ShapeDtypeStruct((n_split, HQ, dim), jnp.float32),
        ),
        grid_spec=grid_spec,
        compiler_params=pltpu.CompilerParams(
            dimension_semantics=("parallel", "arbitrary"),
            vmem_limit_bytes=vmem_limit),
    )(x_flat, wp, bp, wq_eff)

    # --- tiny cross-split log-sum-exp combine + deferred value/output projections ---
    m_g = jnp.max(m_parts, axis=0, keepdims=True)            # (1, HQ, 1)
    coef = jnp.exp(m_parts - m_g)                            # (S, HQ, 1)
    l_g = jnp.sum(coef * l_parts, axis=0)                    # (HQ, 1)
    acc_g = jnp.sum(coef * acc_parts, axis=0)                # (HQ, dim)
    attn = acc_g / l_g                                       # exact normalization

    # Opt #2 epilogue: per-head value projection, mean-pool over queries, output linear.
    o = jnp.einsum('hqc,chd->hqd',
                   attn.reshape(H, Q, dim),
                   wv.reshape(dim, H, hd).astype(jnp.float32))     # (H, Q, hd)
    pooled = jnp.mean(o, axis=1).reshape(1, dim)                    # (1, dim), index h*hd+d
    return pooled @ wo.astype(jnp.float32)                          # (1, out_features)


def reference(x, params, num_heads):
    """Pure-JAX reference mirroring the torch forward."""
    B0, N0, Fin = x.shape
    xf = x.reshape(-1, Fin)
    h = jax.nn.silu(xf) @ params["w_proj"] + params["b_proj"]        # (M, dim)
    M, dim = h.shape
    hd = dim // num_heads
    k = (h @ params["w_k"]).reshape(M, num_heads, hd)
    v = (h @ params["w_v"]).reshape(M, num_heads, hd)
    q = params["cls_token"].reshape(-1, num_heads, hd)               # (Q, H, hd)
    s = jnp.einsum("qhd,nhd->hqn", q, k) / math.sqrt(hd)
    p = jax.nn.softmax(s, axis=-1)
    o = jnp.einsum("hqn,nhd->qhd", p, v).reshape(-1, dim)            # (Q, dim)
    pooled = o.mean(axis=0, keepdims=True)                           # (1, dim)
    return pooled @ params["w_out"]                                  # (1, out_features)


if __name__ == "__main__":
    # Small shapes consistent with the module.  M=20 with tile_m=8 exercises the
    # multi-tile online softmax, the 2-way split, the ragged-key mask and an
    # all-padding tile; the second call exercises the auto-tile (single-tile) path.
    B0, N0 = 2, 10
    in_features, dim, out_features = 32, 32, 16
    num_heads, num_queries = 4, 8

    key = jax.random.PRNGKey(0)
    ks = jax.random.split(key, 7)
    params = {
        "w_proj":    jax.random.normal(ks[0], (in_features, dim), jnp.float32) * 0.05,
        "b_proj":    jax.random.normal(ks[1], (1, dim), jnp.float32) * 0.05,
        "w_k":       jax.random.normal(ks[2], (dim, dim), jnp.float32) * 0.05,
        "w_v":       jax.random.normal(ks[3], (dim, dim), jnp.float32) * 0.05,
        "cls_token": jax.random.normal(ks[4], (num_queries, dim), jnp.float32) * 0.02,
        "w_out":     jax.random.normal(ks[5], (dim, out_features), jnp.float32) * 0.05,
    }
    x = jax.random.normal(ks[6], (B0, N0, in_features), jnp.float32)

    ref = reference(x, params, num_heads)

    out = attention_pooling_classifier(x, params, num_heads=num_heads, tile_m=8)
    out = jax.block_until_ready(out)
    assert out.shape == (1, out_features), out.shape
    err = jnp.max(jnp.abs(out - ref))
    assert jnp.allclose(out, ref, atol=1e-3, rtol=1e-2), err

    out2 = attention_pooling_classifier(x, params, num_heads=num_heads)  # auto tile path
    out2 = jax.block_until_ready(out2)
    err2 = jnp.max(jnp.abs(out2 - ref))
    assert jnp.allclose(out2, ref, atol=1e-3, rtol=1e-2), err2

    print("KERNEL_OK")
</pallas_src>

<mosaic_0001>
module attributes {stable_mosaic.version = 11 : i64} {
  func.func @_attn_pool_kernel(%arg0: i32, %arg1: i32, %arg2: memref<8x32xf32, #tpu.memory_space<vmem>>, %arg3: memref<32x32xf32, #tpu.memory_space<vmem>>, %arg4: memref<1x32xf32, #tpu.memory_space<vmem>>, %arg5: memref<32x32xf32, #tpu.memory_space<vmem>>, %arg6: memref<1x32x1xf32, #tpu.memory_space<vmem>>, %arg7: memref<1x32x1xf32, #tpu.memory_space<vmem>>, %arg8: memref<1x32x32xf32, #tpu.memory_space<vmem>>) attributes {dimension_semantics = [#tpu.dimension_semantics<parallel>, #tpu.dimension_semantics<arbitrary>], iteration_bounds = array<i64: 2, 2>, scalar_prefetch = 0 : i64, scratch_operands = 0 : i64, tpu.core_type = #tpu.core_type<tc>, window_params = [{transform_indices = @transform_0, window_bounds = array<i64: 8, 32>}, {pipeline_mode = #tpu.pipeline_mode<synchronous>, transform_indices = @transform_1, window_bounds = array<i64: 32, 32>}, {pipeline_mode = #tpu.pipeline_mode<synchronous>, transform_indices = @transform_2, window_bounds = array<i64: 1, 32>}, {pipeline_mode = #tpu.pipeline_mode<synchronous>, transform_indices = @transform_3, window_bounds = array<i64: 32, 32>}, {transform_indices = @transform_4, window_bounds = array<i64: 1, 32, 1>}, {transform_indices = @transform_5, window_bounds = array<i64: 1, 32, 1>}, {transform_indices = @transform_6, window_bounds = array<i64: 1, 32, 32>}]} {
    %c0_i32 = arith.constant 0 : i32
    %0 = arith.cmpi eq, %arg1, %c0_i32 : i32
    %1 = arith.extui %0 : i1 to i32
    %c0_i32_0 = arith.constant 0 : i32
    %2 = arith.cmpi ne, %1, %c0_i32_0 : i32
    scf.if %2 {
      %cst_32 = arith.constant 0xFF800000 : f32
      %60 = vector.broadcast %cst_32 : f32 to vector<1x32x1xf32>
      %c0_33 = arith.constant 0 : index
      %c0_34 = arith.constant 0 : index
      %c0_35 = arith.constant 0 : index
      %61 = vector.load %arg6[%c0_33, %c0_34, %c0_35] : memref<1x32x1xf32, #tpu.memory_space<vmem>>, vector<1x32x1xf32>
      tpu.vector_store %arg6[%c0_33, %c0_34, %c0_35], %60 {strides = array<i32>} : memref<1x32x1xf32, #tpu.memory_space<vmem>>, vector<1x32x1xf32>,
      %cst_36 = arith.constant 0.000000e+00 : f32
      %62 = vector.broadcast %cst_36 : f32 to vector<1x32x1xf32>
      %c0_37 = arith.constant 0 : index
      %c0_38 = arith.constant 0 : index
      %c0_39 = arith.constant 0 : index
      %63 = vector.load %arg7[%c0_37, %c0_38, %c0_39] : memref<1x32x1xf32, #tpu.memory_space<vmem>>, vector<1x32x1xf32>
      tpu.vector_store %arg7[%c0_37, %c0_38, %c0_39], %62 {strides = array<i32>} : memref<1x32x1xf32, #tpu.memory_space<vmem>>, vector<1x32x1xf32>,
      %cst_40 = arith.constant 0.000000e+00 : f32
      %64 = vector.broadcast %cst_40 : f32 to vector<1x32x32xf32>
      %c0_41 = arith.constant 0 : index
      %c0_42 = arith.constant 0 : index
      %c0_43 = arith.constant 0 : index
      %65 = vector.load %arg8[%c0_41, %c0_42, %c0_43] : memref<1x32x32xf32, #tpu.memory_space<vmem>>, vector<1x32x32xf32>
      tpu.vector_store %arg8[%c0_41, %c0_42, %c0_43], %64 {strides = array<i32>} : memref<1x32x32xf32, #tpu.memory_space<vmem>>, vector<1x32x32xf32>,
    } else {
    }
    %c0 = arith.constant 0 : index
    %c0_1 = arith.constant 0 : index
    %3 = vector.load %arg2[%c0, %c0_1] : memref<8x32xf32, #tpu.memory_space<vmem>>, vector<8x32xf32>
    %4 = arith.negf %3 : vector<8x32xf32>
    %5 = math.exp %4 : vector<8x32xf32>
    %cst = arith.constant 1.000000e+00 : f32
    %6 = vector.broadcast %cst : f32 to vector<8x32xf32>
    %7 = arith.addf %6, %5 : vector<8x32xf32>
    %8 = arith.divf %6, %7 : vector<8x32xf32>
    %9 = arith.mulf %3, %8 : vector<8x32xf32>
    %c0_2 = arith.constant 0 : index
    %c0_3 = arith.constant 0 : index
    %10 = vector.load %arg3[%c0_2, %c0_3] : memref<32x32xf32, #tpu.memory_space<vmem>>, vector<32x32xf32>
    %cst_4 = arith.constant dense<0.000000e+00> : vector<8x32xf32>
    %11 = tpu.matmul %9, %10, %cst_4 {dimension_numbers = #tpu.dot_dimension_numbers<[1], [0], [0], [1], [0, 0, 1, 1], [], []>} : vector<8x32xf32>, vector<32x32xf32>, vector<8x32xf32> -> vector<8x32xf32>
    %c0_5 = arith.constant 0 : index
    %c0_6 = arith.constant 0 : index
    %12 = vector.load %arg4[%c0_5, %c0_6] : memref<1x32xf32, #tpu.memory_space<vmem>>, vector<1x32xf32>
    %13 = vector.broadcast %12 : vector<1x32xf32> to vector<8x32xf32>
    %14 = arith.addf %11, %13 : vector<8x32xf32>
    %c0_7 = arith.constant 0 : index
    %c0_8 = arith.constant 0 : index
    %15 = vector.load %arg5[%c0_7, %c0_8] : memref<32x32xf32, #tpu.memory_space<vmem>>, vector<32x32xf32>
    %cst_9 = arith.constant dense<0.000000e+00> : vector<32x8xf32>
    %16 = tpu.matmul %15, %14, %cst_9 {dimension_numbers = #tpu.dot_dimension_numbers<[1], [1], [0], [0], [0, 0, 1, 0], [], []>} : vector<32x32xf32>, vector<8x32xf32>, vector<32x8xf32> -> vector<32x8xf32>
    %c0_10 = arith.constant 0 : index
    %c0_11 = arith.constant 0 : index
    %c0_12 = arith.constant 0 : index
    %17 = vector.load %arg6[%c0_10, %c0_11, %c0_12] : memref<1x32x1xf32, #tpu.memory_space<vmem>>, vector<1x32x1xf32>
    %18 = vector.shape_cast %17 : vector<1x32x1xf32> to vector<32x1xf32>
    %cst_13 = arith.constant dense<0xFF800000> : vector<32xf32>
    %19 = vector.multi_reduction <maximumf>, %16, %cst_13 [1] : vector<32x8xf32> to vector<32xf32>
    %20 = vector.shape_cast %19 : vector<32xf32> to vector<32x1xf32>
    %21 = arith.maximumf %18, %20 : vector<32x1xf32>
    %22 = arith.subf %18, %21 : vector<32x1xf32>
    %23 = math.exp %22 : vector<32x1xf32>
    %24 = vector.broadcast %21 : vector<32x1xf32> to vector<32x8xf32>
    %25 = arith.subf %16, %24 : vector<32x8xf32>
    %26 = math.exp %25 : vector<32x8xf32>
    %c2_i32 = arith.constant 2 : i32
    %27 = arith.muli %arg0, %c2_i32 : i32
    %28 = arith.addi %27, %arg1 : i32
    %c8_i32 = arith.constant 8 : i32
    %29 = arith.muli %28, %c8_i32 : i32
    %30 = tpu.iota {dimensions = array<i32: 1>} : vector<1x8xi32>
    %31 = vector.broadcast %29 : i32 to vector<1x8xi32>
    %32 = arith.addi %31, %30 : vector<1x8xi32>
    %c20_i32 = arith.constant 20 : i32
    %33 = vector.broadcast %c20_i32 : i32 to vector<1x8xi32>
    %34 = arith.cmpi slt, %32, %33 : vector<1x8xi32>
    %cst_14 = arith.constant 0.000000e+00 : f32
    %35 = vector.shape_cast %34 : vector<1x8xi1> to vector<1x8xi1>
    %36 = vector.broadcast %35 : vector<1x8xi1> to vector<32x8xi1>
    %37 = vector.broadcast %cst_14 : f32 to vector<32x8xf32>
    %38 = arith.select %36, %26, %37 : vector<32x8xi1>, vector<32x8xf32>
    %c0_15 = arith.constant 0 : index
    %c0_16 = arith.constant 0 : index
    %c0_17 = arith.constant 0 : index
    %39 = vector.load %arg7[%c0_15, %c0_16, %c0_17] : memref<1x32x1xf32, #tpu.memory_space<vmem>>, vector<1x32x1xf32>
    %40 = vector.shape_cast %39 : vector<1x32x1xf32> to vector<32x1xf32>
    %41 = arith.mulf %23, %40 : vector<32x1xf32>
    %cst_18 = arith.constant dense<0.000000e+00> : vector<32xf32>
    %42 = vector.multi_reduction <add>, %38, %cst_18 [1] : vector<32x8xf32> to vector<32xf32>
    %43 = vector.shape_cast %42 : vector<32xf32> to vector<32x1xf32>
    %44 = arith.addf %41, %43 : vector<32x1xf32>
    %c0_19 = arith.constant 0 : index
    %c0_20 = arith.constant 0 : index
    %c0_21 = arith.constant 0 : index
    %45 = vector.load %arg7[%c0_19, %c0_20, %c0_21] : memref<1x32x1xf32, #tpu.memory_space<vmem>>, vector<1x32x1xf32>
    %46 = vector.shape_cast %45 : vector<1x32x1xf32> to vector<32x1xf32>
    %47 = vector.shape_cast %44 : vector<32x1xf32> to vector<1x32x1xf32>
    tpu.vector_store %arg7[%c0_19, %c0_20, %c0_21], %47 {strides = array<i32>} : memref<1x32x1xf32, #tpu.memory_space<vmem>>, vector<1x32x1xf32>,
    %c0_22 = arith.constant 0 : index
    %c0_23 = arith.constant 0 : index
    %c0_24 = arith.constant 0 : index
    %48 = vector.load %arg8[%c0_22, %c0_23, %c0_24] : memref<1x32x32xf32, #tpu.memory_space<vmem>>, vector<1x32x32xf32>
    %49 = vector.shape_cast %48 : vector<1x32x32xf32> to vector<32x32xf32>
    %50 = vector.broadcast %23 : vector<32x1xf32> to vector<32x32xf32>
    %51 = arith.mulf %50, %49 : vector<32x32xf32>
    %cst_25 = arith.constant dense<0.000000e+00> : vector<32x32xf32>
    %52 = tpu.matmul %38, %14, %cst_25 {dimension_numbers = #tpu.dot_dimension_numbers<[1], [0], [0], [1], [0, 0, 1, 1], [], []>} : vector<32x8xf32>, vector<8x32xf32>, vector<32x32xf32> -> vector<32x32xf32>
    %53 = arith.addf %51, %52 : vector<32x32xf32>
    %c0_26 = arith.constant 0 : index
    %c0_27 = arith.constant 0 : index
    %c0_28 = arith.constant 0 : index
    %54 = vector.load %arg8[%c0_26, %c0_27, %c0_28] : memref<1x32x32xf32, #tpu.memory_space<vmem>>, vector<1x32x32xf32>
    %55 = vector.shape_cast %54 : vector<1x32x32xf32> to vector<32x32xf32>
    %56 = vector.shape_cast %53 : vector<32x32xf32> to vector<1x32x32xf32>
    tpu.vector_store %arg8[%c0_26, %c0_27, %c0_28], %56 {strides = array<i32>} : memref<1x32x32xf32, #tpu.memory_space<vmem>>, vector<1x32x32xf32>,
    %c0_29 = arith.constant 0 : index
    %c0_30 = arith.constant 0 : index
    %c0_31 = arith.constant 0 : index
    %57 = vector.load %arg6[%c0_29, %c0_30, %c0_31] : memref<1x32x1xf32, #tpu.memory_space<vmem>>, vector<1x32x1xf32>
    %58 = vector.shape_cast %57 : vector<1x32x1xf32> to vector<32x1xf32>
    %59 = vector.shape_cast %21 : vector<32x1xf32> to vector<1x32x1xf32>
    tpu.vector_store %arg6[%c0_29, %c0_30, %c0_31], %59 {strides = array<i32>} : memref<1x32x1xf32, #tpu.memory_space<vmem>>, vector<1x32x1xf32>,
    return
  }
  func.func @transform_0(%arg0: i32, %arg1: i32) -> (i32, i32) {
    %c2_i32 = arith.constant 2 : i32
    %0 = arith.muli %arg0, %c2_i32 : i32
    %1 = arith.addi %0, %arg1 : i32
    %c0_i32 = arith.constant 0 : i32
    %c0_i32_0 = arith.constant 0 : i32
    return %1, %c0_i32 : i32, i32
  }
  func.func @transform_1(%arg0: i32, %arg1: i32) -> (i32, i32) {
    %c0_i32 = arith.constant 0 : i32
    %c0_i32_0 = arith.constant 0 : i32
    %c0_i32_1 = arith.constant 0 : i32
    return %c0_i32, %c0_i32_0 : i32, i32
  }
  func.func @transform_2(%arg0: i32, %arg1: i32) -> (i32, i32) {
    %c0_i32 = arith.constant 0 : i32
    %c0_i32_0 = arith.constant 0 : i32
    %c0_i32_1 = arith.constant 0 : i32
    return %c0_i32, %c0_i32_0 : i32, i32
  }
  func.func @transform_3(%arg0: i32, %arg1: i32) -> (i32, i32) {
    %c0_i32 = arith.constant 0 : i32
    %c0_i32_0 = arith.constant 0 : i32
    %c0_i32_1 = arith.constant 0 : i32
    return %c0_i32, %c0_i32_0 : i32, i32
  }
  func.func @transform_4(%arg0: i32, %arg1: i32) -> (i32, i32, i32) {
    %c0_i32 = arith.constant 0 : i32
    %c0_i32_0 = arith.constant 0 : i32
    %c0_i32_1 = arith.constant 0 : i32
    return %arg0, %c0_i32, %c0_i32_0 : i32, i32, i32
  }
  func.func @transform_5(%arg0: i32, %arg1: i32) -> (i32, i32, i32) {
    %c0_i32 = arith.constant 0 : i32
    %c0_i32_0 = arith.constant 0 : i32
    %c0_i32_1 = arith.constant 0 : i32
    return %arg0, %c0_i32, %c0_i32_0 : i32, i32, i32
  }
  func.func @transform_6(%arg0: i32, %arg1: i32) -> (i32, i32, i32) {
    %c0_i32 = arith.constant 0 : i32
    %c0_i32_0 = arith.constant 0 : i32
    %c0_i32_1 = arith.constant 0 : i32
    return %arg0, %c0_i32, %c0_i32_0 : i32, i32, i32
  }
}

</mosaic_0001>

<bundles_post_ra>
// kernel: tpu_custom_call.1
= control target key start
LH: loop header
LB: loop body
LE: loop exit
PB: predicated region body
PF: predicated region fallthrough
CT: control target
= control target key end

     0   :  { %s1916_s0 = inlined_call_operand.hbm [shape: f32[32,32], index: 0, kind: input, shape index: {}]   ;;  %s1917_s1 = inlined_call_operand.hbm [shape: f32[32,32], index: 1, kind: input, shape index: {}]   ;;  %s1918_s2 = inlined_call_operand.vmem [shape: f32[1,32], index: 2, kind: input, shape index: {}]   ;;  %s1919_s3 = inlined_call_operand.hbm [shape: f32[32,32], index: 3, kind: input, shape index: {}]   ;;  %s1920_s4 = inlined_call_operand.vmem [shape: f32[2,32,1], index: 4, kind: output, shape index: {0}]   ;;  %s1921_s5 = inlined_call_operand.vmem [shape: f32[2,32,1], index: 5, kind: output, shape index: {1}]   ;;  %s1922_s6 = inlined_call_operand.hbm [shape: f32[2,32,32], index: 6, kind: output, shape index: {2}]  }
   0x1   :  { %1935 = sst [smem:[#allocation18_spill]] %s1917_s1 }
   0x2   :  { %1936 = sst [smem:[#allocation19_spill]] %s1918_s2 }
   0x3   :  { %1937 = sst [smem:[#allocation20_spill]] %s1919_s3 }
   0x4   :  { %1938 = sst [smem:[#allocation21_spill]] %s1922_s6 }
   0x5   :  { %12 = vsyncpa [#allocation3], 0 }
   0x6   :  { %14 = vsyncpa [#allocation3 + $0x1], 0 }
   0x7   :  { %15 = vsyncpa [#allocation6], 0 }
   0x8   :  { %16 = vsyncpa [#allocation4], 0 }
   0x9   :  { %18 = vsyncpa [#allocation4 + $0x1], 0  ;;  %s1497_s21 = smov 0   ;;  %s1499_s22 = smov 0  }
   0xa   :  { %s1501_s23 = smov 0   ;;  %s1503_s24 = smov 0  }
   0xb   :  { %s1505_s25 = smov 0   ;;  %s1507_s26 = smov 0  }
   0xc   :  { %s1509_s27 = smov 0   ;;  %s1511_s28 = smov 0  }
   0xd   :  { %s1513_s29 = smov 0   ;;  %s1515_s30 = smov 0  }
   0xe   :  { %s1517_s7 = smov 0  }
   0xf LB: > { %1939 = sst [smem:[#allocation12_spill]] %s1406_s21  ;;  %s986_s8 = sadd.s32 4294967295, %s1446_s7   ;;  %s1446_s7 = sphi %s1517_s7, %s24_s7   ;;  %s1442_s30 = sphi %s1515_s30, %s1978_s30   ;;  %s1438_s29 = sphi %s1513_s29, %s1977_s29   ;;  %s1434_s28 = sphi %s1511_s28, %s1976_s28   ;;  %s1430_s27 = sphi %s1509_s27, %s1968_s27   ;;  %s1426_s26 = sphi %s1507_s26, %s1975_s26   ;;  %s1422_s25 = sphi %s1505_s25, %s1974_s25   ;;  %s1418_s24 = sphi %s1503_s24, %s1973_s24   ;;  %s1414_s23 = sphi %s1501_s23, %s1972_s23   ;;  %s1410_s22 = sphi %s1499_s22, %s1971_s22   ;;  %s1406_s21 = sphi %s1497_s21, %s1970_s21  }
  0x10   : > { %1940 = sst [smem:[#allocation13_spill]] %s1430_s27  ;;  %s987_s9 = sadd.s32 4294967294, %s1446_s7  }
  0x11   : > { %1941 = sst [smem:[#allocation14_spill]] %s1438_s29  ;;  %p60_p0 = scmp.ne.s32.totalorder %s1422_s25, %s1418_s24 }
  0x12   : > { %p1553_p1 = scmp.eq.s32.totalorder %s986_s8, 0  ;;  %p198_p2 = scmp.ne.s32.totalorder %s1414_s23, %s1410_s22 }
  0x13   : > { %p199_p3 = scmp.eq.s32.totalorder %s986_s8, 3  ;;  %p204_p5 = scmp.ne.s32.totalorder %s1410_s22, %s1406_s21 }
  0x14   : > { %s1942_s10 = scalar_select %p1553_p1, 1, 0 }
  0x15   : > { %p1561_p4 = por %p1553_p1, %p60_p0  ;;  %p1567_p6 = por %p199_p3, %p198_p2 }
  0x16   : > { %p205_p7 = scmp.eq.s32.totalorder %s987_s9, 3  ;;  %p990_p8 = scmp.ge.s32.totalorder %s1446_s7, 1 }
  0x17   : > { %s1943_s11 = scalar_select %p1561_p4, 1, 0 }
  0x18   : > { %s1944_s12 = scalar_select %p1567_p6, 1, 0 }
  0x19   : > { %p212_p9 = scmp.lt.s32.totalorder %s1446_s7, 5  ;;  %p1573_p10 = por %p205_p7, %p204_p5 }
  0x1a   : > { %1945 = sst [smem:[#allocation15_spill]] %s1944_s12  ;;  %s1448_s15 = smov [#allocation5]  }
  0x1b   : > { %s1946_s13 = scalar_select %p1573_p10, 1, 0 }
  0x1c   : > { %p1577_p11 = pnand %p990_p8, %p212_p9  ;;  %s224_s16 = sshll.u32 %s1448_s15, 4  ;;  %s225_s16 = int_to_ptr.vmem [resolvable:$true] %s224_s16 }
  0x1d   : > { %1947 = sst [smem:[#allocation16_spill]] %s1946_s13  ;;  %s1449_s18 = smov [#allocation7]  }
  0x1e   : > { %s1948_s14 = scalar_select %p1577_p11, 1, 0 }
  0x1f   : > { %p1091_p12 = pneg %p1577_p11  ;;  %s240_s19 = sshll.u32 %s1449_s18, 4  ;;  %s1589_s19 = int_to_ptr.vmem [resolvable:$true] %s240_s19 }
  0x20   : > { %s1950_s1 = sld [smem:[#allocation18_spill]] }
  0x21   : > { %p1585_p13 = pnand %p1091_p12, %p1553_p1 }
  0x23   : > { %p1236_p2 = pneg %p1585_p13 }
  0x26   : > { %s1234_s8 = scalar_lea.hbm %s1950_s1, 512 }
  0x27   : > { %p1235_p0 = scmp.ne.s32.totalorder %s1950_s1, %s1234_s8  ;;  %p1241_p7 = scmp.lt.u32.totalorder %s1234_s8, %s1950_s1 }
  0x29   : > { %p1237_p3 = pnand %p1236_p2, %p1235_p0 }
  0x2b   : > { %p1238_p5 = pneg %p1237_p3 }
  0x2d   : > { %p1243_p8 = pnand %p1241_p7, %p1238_p5 }
  0x2f   : > { %1246 = shalt.err (!%p1243_p8)
}
  0x30   : > { %s1247_s18 = scalar_lea.vmem %s225_s16, 512  ;;  %p1255_p6 = scmp.lt.s32.totalorder %s225_s16, %s225_s16 }
  0x31   : > { %p1248_p9 = scmp.ne.s32.totalorder %s225_s16, %s1247_s18  ;;  %p1256_p1 = scmp.lt.s32.totalorder %s1247_s18, %s1247_s18 }
  0x33   : > { %p1250_p12 = pnand %p1248_p9, %p1236_p2  ;;  %p1257_p4 = por %p1256_p1, %p1255_p6 }
  0x35   : > { %p1251_p10 = pneg %p1250_p12 }
  0x37   : > { %p1258_p11 = pnand %p1257_p4, %p1251_p10 }
  0x39   : > { %1261 = shalt.err (!%p1258_p11)
}
  0x3a   : > { %s1450_s20 = smov 128   ;;  %s1451_s24 = smov 8  }
  0x3b   : > { %1094 = dma.hbm_to_vmem [thread:$0]  (!%p1585_p13), %s1950_s1, 512, %s225_s16, [#allocation6], %s1450_s20, %s1450_s20, %s1451_s24  }
  0x3c   : > { %s1951_s3 = sld [smem:[#allocation20_spill]] }
  0x42   : > { %s1262_s15 = scalar_lea.hbm %s1951_s3, 512 }
  0x43   : > { %p1263_p0 = scmp.ne.s32.totalorder %s1951_s3, %s1262_s15  ;;  %p1269_p6 = scmp.lt.u32.totalorder %s1262_s15, %s1951_s3 }
  0x45   : > { %p1265_p1 = pnand %p1263_p0, %p1236_p2 }
  0x47   : > { %p1266_p4 = pneg %p1265_p1 }
  0x49   : > { %p1271_p10 = pnand %p1269_p6, %p1266_p4 }
  0x4b   : > { %1274 = shalt.err (!%p1271_p10)
}
  0x4c   : > { %s1275_s16 = scalar_lea.vmem %s1589_s19, 512  ;;  %p1283_p7 = scmp.lt.s32.totalorder %s1589_s19, %s1589_s19 }
  0x4d   : > { %p1276_p11 = scmp.ne.s32.totalorder %s1589_s19, %s1275_s16  ;;  %p1284_p8 = scmp.lt.s32.totalorder %s1275_s16, %s1275_s16 }
  0x4f   : > { %p1278_p3 = pnand %p1276_p11, %p1236_p2  ;;  %p1285_p9 = por %p1284_p8, %p1283_p7 }
  0x51   : > { %p1279_p5 = pneg %p1278_p3 }
  0x53   : > { %p1286_p12 = pnand %p1285_p9, %p1279_p5 }
  0x55   : > { %1289 = shalt.err (!%p1286_p12)
}
  0x56   : > { %1097 = dma.hbm_to_vmem [thread:$0]  (!%p1585_p13), %s1951_s3, 512, %s1589_s19, [#allocation6], %s1450_s20, %s1450_s20, %s1451_s24  }
  0x57   : > { %s33_s12 = sadd.s32 1, %s1438_s29  ;;  %s36_s17 = sadd.s32 1, %s1442_s30 }
  0x58   : > { %p34_p2 = scmp.ge.s32.totalorder %s33_s12, 2  ;;  %s988_s21 = sshll.u32 %s1442_s30, 1 }
  0x59   : > { %s47_s13 = sadd.s32 1, %s1426_s26  ;;  %s41_s8 = sadd.s32 %s1438_s29, %s988_s21 }
  0x5a   : > { %s1980_s12 = smov (%p34_p2, %s33_s12), 0  ;;  %s1982_s17 = smov (!%p34_p2, %s36_s17), %s1442_s30 }
  0x5b   : > { %p54_p0 = scmp.ne.s32.totalorder %s1426_s26, %s1422_s25  ;;  %p38_p1 = scmp.ge.s32.totalorder %s1982_s17, 2 }
  0x5c   : > { %p55_p4 = scmp.eq.s32.totalorder %s1446_s7, 0  ;;  %s188_s9 = sadd.s32 1, %s1414_s23 }
  0x5d   : > { %p1108_p6 = scmp.lt.s32.totalorder %s1446_s7, 4  ;;  %s1984_s17 = smov (%p38_p1, %s1982_s17), 0 }
  0x5e   : > { %1952 = sst [smem:[#allocation17_spill]] %s1984_s17  ;;  %p1653_p13 = por %p55_p4, %p54_p0 }
  0x5f   : > { %s254_s20 = sand.u32 1, %s1426_s26   ;;  %s989_s24 = sshll.u32 %s1984_s17, 1 }
  0x60   : > { %s185_s15 = ssub.s32 %s1442_s30, %s1984_s17  ;;  %s43_s18 = sadd.s32 %s989_s24, %s1980_s12 }
  0x61   : > { %p186_p10 = scmp.eq.s32.totalorder %s185_s15, 0  ;;  %s44_s16 = ssub.s32 %s41_s8, %s43_s18 }
  0x62   : > { %p45_p11 = scmp.eq.s32.totalorder %s44_s16, 0  ;;  %s994_s2 = sshll.u32 %s254_s20, 3 }
  0x63   : > { %s1663_s6 = scalar_select %p186_p10, %s1414_s23, %s188_s9  }
  0x64   : > { %s1666_s21 = scalar_select %p45_p11, %s1426_s26, %s47_s13  }
  0x65   : > { %s996_s1 = sshll.u32 %s41_s8, 7  ;;  %s258_s17 = scalar_lea.vmem [#allocation2], %s994_s2 }
  0x66   : > { %s1671_s27 = scalar_lea.hbm %s1916_s0, %s996_s1  ;;  %s267_s24 = sshll.u32 %s258_s17, 4  ;;  %s1673_s24 = int_to_ptr.vmem [resolvable:$true] %s267_s24 }
  0x67   : > { %p1679_p3 = pnand %p1108_p6, %p1653_p13  ;;  %s255_s13 = scalar_lea.sflag [#allocation3], %s254_s20 }
  0x68   : > { %s1290_s3 = scalar_lea.hbm %s1671_s27, 128  ;;  %s1295_s17 = scalar_lea.hbm %s1916_s0, 512 }
  0x69   : > { %p1291_p5 = scmp.ne.s32.totalorder %s1671_s27, %s1290_s3  ;;  %p1292_p7 = pneg %p1679_p3 }
  0x6a   : > { %p1296_p12 = scmp.lt.u32.totalorder %s1671_s27, %s1916_s0  ;;  %p1297_p2 = scmp.lt.u32.totalorder %s1295_s17, %s1290_s3 }
  0x6b   : > { %p1293_p8 = pnand %p1292_p7, %p1291_p5  ;;  %p1299_p1 = scmp.lt.u32.totalorder %s1290_s3, %s1671_s27 }
  0x6c   : > { %p1298_p0 = por %p1297_p2, %p1296_p12 }
  0x6d   : > { %p1294_p9 = pneg %p1293_p8 }
  0x6e   : > { %p1300_p4 = por %p1299_p1, %p1298_p0 }
  0x70   : > { %p1301_p6 = pnand %p1300_p4, %p1294_p9 }
  0x72   : > { %1304 = shalt.err (!%p1301_p6)
}
  0x73   : > { %s1305_s20 = scalar_lea.vmem %s1673_s24, 128  ;;  %s1452_s15 = smov [#allocation2]  }
  0x74   : > { %p1306_p13 = scmp.ne.s32.totalorder %s1673_s24, %s1305_s20  ;;  %s1310_s18 = sshll.u32 %s1452_s15, 4  ;;  %s1311_s18 = int_to_ptr.vmem [resolvable:$false] %s1310_s18 }
  0x75   : > { %s1312_s16 = scalar_lea.vmem %s1311_s18, 256  ;;  %p1313_p5 = scmp.lt.s32.totalorder %s1673_s24, %s1311_s18 }
  0x76   : > { %p1308_p10 = pnand %p1306_p13, %p1292_p7  ;;  %p1314_p8 = scmp.lt.s32.totalorder %s1312_s16, %s1305_s20 }
  0x78   : > { %p1309_p11 = pneg %p1308_p10  ;;  %p1315_p12 = por %p1314_p8, %p1313_p5 }
  0x7a   : > { %p1316_p2 = pnand %p1315_p12, %p1309_p11 }
  0x7c   : > { %1319 = shalt.err (!%p1316_p2)
}
  0x7d   : > { %1101 = dma.hbm_to_vmem [thread:$0]  (!%p1679_p3), %s1671_s27, 128, %s1673_s24, %s255_s13  }
  0x7e   : > { %p1955_p9 = scmp.ne.s32.totalorder %s1948_s14, 0 }
  0x7f   : > { %s278_s2 = sand.u32 (!%p1955_p9), 1, %s1422_s25   ;;  %p1956_p7 = scmp.ne.s32.totalorder (!%p1955_p9), %s1943_s11, 0 }
  0x80   : > { %276 = sbr.rel (%p1955_p9) target bundleno = 1144 (0x478), region = 36  ;;  %s1711_s3 = sshll.u32 (!%p1955_p9), %s278_s2, 3 }
  0x81   : > { %s279_s1 = scalar_lea.sflag (!%p1955_p9), [#allocation3], %s278_s2  ;;  %s282_s29 = scalar_lea.vmem (!%p1955_p9), [#allocation2], %s1711_s3 }
  0x87   : > { %1393 = dma.done.wait (%p1956_p7), %s279_s1, 128  }
  0x88   : > { %1395 = vsyncadd (%p1956_p7), %s279_s1, 4294967168  ;;  %p1957_p0 = scmp.ne.s32.totalorder %s1942_s10, 0 }
  0x8a   : > { %1397 = dma.done.wait (%p1957_p0), [#allocation6], 1024  }
  0x8b   : > { %1399 = vsyncadd (%p1957_p0), [#allocation6], 4294966272  ;;  %s326_s27 = sand.u32 1, %s1410_s22   ;;  %p331_p3 = scmp.lt.s32.totalorder %s1434_s28, 1 }
  0x8c   : > { %s1001_s14 = sshll.u32 %s326_s27, 5  ;;  %s1958_s15 = sld [smem:[#allocation13_spill]] }
  0x8d   : > { %s332_s24 = scalar_select %p331_p3, %s1434_s28, 1 }
  0x8e   : > { %s1737_s20 = scalar_lea.vmem [#allocation8], %s1001_s14 }
  0x8f   : > { %s1026_s9 = sshll.u32 %s332_s24, 5 }
  0x90   : > { %s1730_s11 = scalar_lea.vmem %s1920_s4, %s1026_s9  ;;  %s1735_s10 = scalar_lea.vmem %s1921_s5, %s1026_s9 }
  0x92   : > { %p1006_p1 = scmp.ne.s32.totalorder %s1958_s15, 0 }
  0x93   : > { %vm345_vm0 = vcmask (!%p1006_p1), 7168   ;;  %vm354_vm1 = vcmask (!%p1006_p1), 261120   ;;  %v1453_v0 = vmov (!%p1006_p1), -inf   ;;  %v1454_v1 = vmov (!%p1006_p1), 0.0  }
  0x94   : > { %344 = sbr.rel (%p1006_p1) target bundleno = 155 (0x9b), region = 52  ;;  %346 = vst.msk [vmem:[%s1730_s11] sm:$0xff] (!%p1006_p1), %vm345_vm0, %v1453_v0  ;;  %347 = vst.msk [vmem:[%s1730_s11 + $0x8] sm:$0xff] (!%p1006_p1), %vm345_vm0, %v1453_v0 }
  0x95   : > { %348 = vst.msk [vmem:[%s1730_s11 + $0x10] sm:$0xff] (!%p1006_p1), %vm345_vm0, %v1453_v0  ;;  %349 = vst.msk [vmem:[%s1730_s11 + $0x18] sm:$0xff] (!%p1006_p1), %vm345_vm0, %v1453_v0 }
  0x96   : > { %350 = vst.msk [vmem:[%s1735_s10] sm:$0xff] (!%p1006_p1), %vm345_vm0, %v1454_v1  ;;  %351 = vst.msk [vmem:[%s1735_s10 + $0x8] sm:$0xff] (!%p1006_p1), %vm345_vm0, %v1454_v1 }
  0x97   : > { %352 = vst.msk [vmem:[%s1735_s10 + $0x10] sm:$0xff] (!%p1006_p1), %vm345_vm0, %v1454_v1  ;;  %353 = vst.msk [vmem:[%s1735_s10 + $0x18] sm:$0xff] (!%p1006_p1), %vm345_vm0, %v1454_v1 }
  0x98   : > { %355 = vst.msk [vmem:[%s1737_s20] sm:$0xff] (!%p1006_p1), %vm354_vm1, %v1454_v1  ;;  %356 = vst.msk [vmem:[%s1737_s20 + $0x8] sm:$0xff] (!%p1006_p1), %vm354_vm1, %v1454_v1 }
  0x99   : > { %357 = vst.msk [vmem:[%s1737_s20 + $0x10] sm:$0xff] (!%p1006_p1), %vm354_vm1, %v1454_v1  ;;  %358 = vst.msk [vmem:[%s1737_s20 + $0x18] sm:$0xff] (!%p1006_p1), %vm354_vm1, %v1454_v1 }
  0x9b PF: > { %v367_v2 = vld [vmem:[#allocation5] sm:$0xff]  ;;  %v368_v3 = vld [vmem:[#allocation5 + $0x8] sm:$0xff]  ;;  %v369_v4 = vld [vmem:[#allocation5 + $0x10] sm:$0xff]  ;;  %v1455_v5 = vmov 0.0|0.0   ;;  %vm1456_vm2 = vmmov 0   ;;  %v1457_v8 = vmov 0.0   ;;  %v624_v56 = vlaneseq }
  0x9c   : > { %1071 = vmatprep.subr.bf16.mxu0 %v1455_v5  ;;  %v1072_v6 = vpack.c.bf16 %v368_v3, %v367_v2  ;;  %v370_v7 = vld [vmem:[#allocation5 + $0x18] sm:$0xff]  ;;  %1052 = vmatprep.mubr.msk.f32.mxu0 %vm1456_vm2, %v1457_v8  ;;  %vm378_vm3 = vcmask 261120   ;;  %v452_v16 = vld [vmem:[#allocation7] sm:$0xff]  ;;  %s1959_s2 = sld [smem:[#allocation19_spill]]  ;;  %v453_v21 = vld [vmem:[#allocation7 + $0x8] sm:$0xff]  ;;  %vm560_vm4 = vcmask 64512  }
  0x9d   : > { %v359_v9 = vld [vmem:[%s282_s29] sm:$0xff]  ;;  %v1075_v11 = vpack.c.bf16 %v370_v7, %v369_v4  ;;  %1057 = vmatprep.mubr.msk.f32.mxu1 %vm378_vm3, %v452_v16  ;;  %v1458_v32 = vmov 0   ;;  %vm659_vm5 = vcmask 7168   ;;  %v1779_v39 = vld [vmem:[%s1730_s11 + $0x18] sm:$0xff]  ;;  %v558_v41 = vld [vmem:[%s1730_s11 + $0x10] sm:$0xff]  ;;  %s1960_s3 = sld [smem:[#allocation13_spill]] }
  0x9e   : > { %v1007_v10 = vmul.f32 -1.442695, %v359_v9  ;;  %1073 = vmatpush3.bf16.msra.mxu0 %v1072_v6  ;;  %v454_v22 = vld [vmem:[#allocation7 + $0x10] sm:$0xff]  ;;  %v455_v23 = vld [vmem:[#allocation7 + $0x18] sm:$0xff]  ;;  %1213 = vset.pattern.permute.xlu1 %v1458_v32  ;;  %s1015_s1 = sshll.u32 %s1434_s28, 1  ;;  %v625_v61 = vand.u32 127, %v624_v56 }
  0x9f   : > { %1074 = vmatprep.subr.bf16.mxu0 %v1455_v5  ;;  %1212 = vset.pattern.permute.xlu0 %v1458_v32  ;;  %v1772_v33 = vld [vmem:[%s1730_s11 + $0x8] sm:$0xff]  ;;  %v556_v34 = vld [vmem:[%s1730_s11] sm:$0xff]  ;;  %s1961_s24 = sld [smem:[#allocation15_spill]]  ;;  %s1028_s9 = sshll.u32 %s1434_s28, 9 }
  0xa0   : > { %1214 = vpow2.f32 %v1007_v10  ;;  %s831_s13 = sshll.u32 %s1737_s20, 4  ;;  %s1962_s8 = sld [smem:[#allocation21_spill]]  ;;  %s1847_s13 = int_to_ptr.vmem [resolvable:$true] %s831_s13 }
  0xa1   : > { %s1855_s28 = scalar_lea.sflag [#allocation4], %s326_s27  ;;  %s1459_s15 = smov [#allocation8]  }
  0xa2   : > { %1076 = vmatpush3.bf16.msra.mxu0 %v1075_v11  ;;  %v1008_v17 = vld [vmem:[%s1959_s2] ss:$0 sm:$0xff]  ;;  %s1324_s18 = sshll.u32 %s1459_s15, 4  ;;  %s1325_s18 = int_to_ptr.vmem [resolvable:$false] %s1324_s18 }
  0xa3   : > { %s622_s29 = sadd.s32 %s1960_s3, %s1015_s1  ;;  %s1326_s16 = scalar_lea.vmem %s1325_s18, 1024 }
  0xa4   : > { %s1016_s14 = sshll.u32 %s622_s29, 3  ;;  %p1327_p11 = scmp.lt.s32.totalorder %s1847_s13, %s1325_s18 }
  0xa5   : > { %v626_v63 = vstv %s1016_s14  ;;  %p1963_p6 = scmp.ne.s32.totalorder %s1961_s24, 0 }
  0xa6   : > { %v627_v2 = vadd.s32 %v626_v63, %v625_v61  ;;  %s1845_s19 = scalar_lea.hbm %s1962_s8, %s1028_s9 }
  0xa8   : > { %vm628_vm6 = vcmp.lt.s32.totalorder %v627_v2, 20 }
  0xaa   : > { %v1215_v12 = vpop.eup %1214 }
  0xab   : > { %v363_v13 = vadd.f32 1.0, %v1215_v12 }
  0xad   : > { %1216 = vrcp.f32 %v363_v13 }
  0xb7   : > { %v1217_v14 = vpop.eup %1216 }
  0xb8   : > { %v366_v15 = vmul.f32 %v1217_v14, %v359_v9 }
  0xba   : > { %1053 = vmatmul.mubr.msk.f32.vlgmr.msra.gmra.mrb[0].mxu0 %vm378_vm3, %v366_v15 }
 0x18d   : > { %v448_v18 = vpop.f32.mrb[0].mxu0 }
 0x18e   : > { %v449_v19 = vadd.f32 %v1008_v17, %v448_v18  ;;  %v1054_v20 = vpop.f32.mrb[1].mxu0 }
 0x190   : > { %1055 = vmatprep.subr.msk.mxu1 %vm378_vm3, %v449_v19  ;;  %1063 = vmatprep.subr.mxu0 %v449_v19 }
 0x191   : > { %1056 = vmatpush3.xpose.msk.msra.mxu1 %vm378_vm3, %v449_v19  ;;  %1064 = vmatpush3.msra.mxu0 %v449_v19 }
 0x192   : > { %1077 = vmatprep.subr.mxu1 %v449_v19 }
 0x194   : > { %1058 = vmatmul.mubr.msk.f32.vlgmr.msra.gmra.mrb[0].mxu1 %vm378_vm3, %v453_v21 }
 0x195   : > { %1078 = vmatpush3.msra.mxu1 %v449_v19  ;;  %1060 = vmatprep.mubr.msk.f32.mxu1 %vm378_vm3, %v454_v22  ;;  %v636_v22 = vld [vmem:[%s1735_s10 + $0x8] sm:$0xff] }
 0x198   : > { %1061 = vmatmul.mubr.msk.f32.gmra.mrb[2].mxu1 %vm378_vm3, %v455_v23 }
 0x267   : > { %v1059_v24 = vpop.f32.mrb[0].mxu1 }
 0x268   : > { %v537_v25 = vpop.f32.mrb[1].mxu1  ;;  %v564_v26 = vsel %vm560_vm4, %v1059_v24, -inf }
 0x269   : > { %565 = vmax.xlane.f32.xlu1 %v564_v26  ;;  %v561_v27 = vsel %vm560_vm4, %v537_v25, -inf }
 0x26a   : > { %562 = vmax.xlane.f32.xlu0 %v561_v27 }
 0x26b   : > { %v1766_v28 = vpop.f32.mrb[2].mxu1 }
 0x26c   : > { %v547_v29 = vpop.f32.mrb[3].mxu1  ;;  %v570_v30 = vsel %vm560_vm4, %v1766_v28, -inf }
 0x26d   : > { %571 = vmax.xlane.f32.xlu1 %v570_v30  ;;  %v567_v31 = vsel %vm560_vm4, %v547_v29, -inf }
 0x26e   : > { %568 = vmax.xlane.f32.xlu0 %v567_v31  ;;  %v638_v31 = vld [vmem:[%s1735_s10 + $0x18] sm:$0xff] }
 0x2f6   : > { %v566_v35 = vpop.xlane.xlu1 %565 }
 0x2f7   : > { %v1776_v36 = vmax.f32 %v1772_v33, %v566_v35  ;;  %v563_v37 = vpop.xlane.xlu0 %562 }
 0x2f8   : > { %v573_v38 = vmax.f32 %v556_v34, %v563_v37 }
 0x2f9   : > { %v578_v40 = vsub.f32 %v1772_v33, %v1776_v36  ;;  %798 = vst.msk [vmem:[%s1730_s11 + $0x8] sm:$0xff] %vm659_vm5, %v1776_v36  ;;  %596 = vperm.xlu1 %1213, %v1776_v36  }
 0x2fa   : > { %v577_v42 = vsub.f32 %v556_v34, %v573_v38  ;;  %797 = vst.msk [vmem:[%s1730_s11] sm:$0xff] %vm659_vm5, %v573_v38  ;;  %v572_v43 = vpop.xlane.xlu1 %571  ;;  %591 = vperm.xlu0 %1212, %v573_v38   ;;  %v637_v34 = vld [vmem:[%s1735_s10 + $0x10] sm:$0xff] }
 0x2fb   : > { %v1791_v44 = vmax.f32 %v1779_v39, %v572_v43  ;;  %v569_v45 = vpop.xlane.xlu0 %568  ;;  %v583_v14 = vmul.f32 1.442695, %v578_v40 }
 0x2fc   : > { %v581_v46 = vmul.f32 1.442695, %v577_v42  ;;  %v575_v47 = vmax.f32 %v558_v41, %v569_v45 }
 0x2fd   : > { %v580_v48 = vsub.f32 %v1779_v39, %v1791_v44  ;;  %800 = vst.msk [vmem:[%s1730_s11 + $0x18] sm:$0xff] %vm659_vm5, %v1791_v44  ;;  %v665_v39 = vld [vmem:[%s1737_s20 + $0x8] sm:$0xff] }
 0x2fe   : > { %1218 = vpow2.f32 %v581_v46  ;;  %v579_v49 = vsub.f32 %v558_v41, %v575_v47  ;;  %799 = vst.msk [vmem:[%s1730_s11 + $0x10] sm:$0xff] %vm659_vm5, %v575_v47  ;;  %601 = vperm.xlu1 %1213, %v575_v47   ;;  %v664_v41 = vld [vmem:[%s1737_s20] sm:$0xff] }
 0x2ff   : > { %v587_v18 = vmul.f32 1.442695, %v580_v48  ;;  %v667_v48 = vld [vmem:[%s1737_s20 + $0x18] sm:$0xff] }
 0x300   : > { %v585_v50 = vmul.f32 1.442695, %v579_v49 }
 0x302   : > { %1220 = vpow2.f32 %v585_v50  ;;  %606 = vperm.xlu1 %1213, %v1791_v44   ;;  %v666_v50 = vld [vmem:[%s1737_s20 + $0x10] sm:$0xff] }
 0x308   : > { %v1219_v51 = vpop.eup %1218 }
 0x309   : > { %670 = vperm.xlu1 %1213, %v1219_v51  }
 0x30c   : > { %v1801_v52 = vpop.eup %1220 }
 0x30d   : > { %680 = vperm.xlu1 %1213, %v1801_v52   ;;  %v641_v36 = vmul.f32 %v1801_v52, %v637_v34 }
 0x378   : > { %v597_v53 = vpop.permute.xlu1 %596 }
 0x379   : > { %v610_v54 = vsub.f32 %v1059_v24, %v597_v53  ;;  %v592_v55 = vpop.permute.xlu0 %591  ;;  %v635_v24 = vld [vmem:[%s1735_s10] sm:$0xff] }
 0x37a   : > { %v609_v57 = vsub.f32 %v537_v25, %v592_v55  ;;  %v639_v27 = vmul.f32 %v1219_v51, %v635_v24 }
 0x37b   : > { %v615_v58 = vmul.f32 1.442695, %v610_v54 }
 0x37c   : > { %v613_v59 = vmul.f32 1.442695, %v609_v57 }
 0x37d   : > { %1222 = vpow2.f32 %v615_v58  ;;  %v602_v60 = vpop.permute.xlu1 %601 }
 0x37e   : > { %1224 = vpow2.f32 %v613_v59  ;;  %v611_v62 = vsub.f32 %v547_v29, %v602_v60 }
 0x380   : > { %v617_v0 = vmul.f32 1.442695, %v611_v62 }
 0x381   : > { %v607_v1 = vpop.permute.xlu1 %606 }
 0x382   : > { %1226 = vpow2.f32 %v617_v0  ;;  %v612_v3 = vsub.f32 %v1766_v28, %v607_v1 }
 0x384   : > { %v619_v4 = vmul.f32 1.442695, %v612_v3 }
 0x386   : > { %1228 = vpow2.f32 %v619_v4 }
 0x387   : > { %v1223_v5 = vpop.eup %1222  ;;  %1230 = vpow2.f32 %v583_v14 }
 0x388   : > { %v1225_v6 = vpop.eup %1224  ;;  %v632_v7 = vsel %vm628_vm6, %v1223_v5, 0.0  ;;  %1232 = vpow2.f32 %v587_v18  ;;  %v671_v21 = vpop.permute.xlu1 %670 }
 0x389   : > { %v646_v8 = vsel %vm560_vm4, %v632_v7, 0.0  ;;  %v631_v9 = vsel %vm628_vm6, %v1225_v6, 0.0  ;;  %v688_v43 = vmul.f32 %v671_v21, %v664_v41 }
 0x38a   : > { %647 = vadd.xlane.f32.xlu0 %v646_v8  ;;  %1065 = vmatprep.mubr.msk.f32.mxu0 %vm560_vm4, %v631_v9  ;;  %v643_v10 = vsel %vm560_vm4, %v631_v9, 0.0 }
 0x38b   : > { %1066 = vmatmul.mubr.msk.f32.vlgmr.msra.gmra.mrb[2].mxu0 %vm560_vm4, %v632_v7  ;;  %644 = vadd.xlane.f32.xlu1 %v643_v10 }
 0x38c   : > { %v1227_v11 = vpop.eup %1226  ;;  %v681_v23 = vpop.permute.xlu1 %680 }
 0x38d   : > { %v633_v12 = vsel %vm628_vm6, %v1227_v11, 0.0  ;;  %v690_v52 = vmul.f32 %v681_v23, %v666_v50 }
 0x38e   : > { %1068 = vmatprep.mubr.msk.f32.mxu1 %vm560_vm4, %v633_v12  ;;  %v649_v17 = vsel %vm560_vm4, %v633_v12, 0.0 }
 0x390   : > { %v1229_v13 = vpop.eup %1228 }
 0x391   : > { %v634_v15 = vsel %vm628_vm6, %v1229_v13, 0.0  ;;  %v1231_v19 = vpop.eup %1230 }
 0x392   : > { %1069 = vmatmul.mubr.msk.f32.vlgmr.msra.gmra.mrb[4].mxu1 %vm560_vm4, %v634_v15  ;;  %v652_v16 = vsel %vm560_vm4, %v634_v15, 0.0  ;;  %v1233_v20 = vpop.eup %1232  ;;  %v640_v25 = vmul.f32 %v1231_v19, %v636_v22 }
 0x393   : > { %653 = vadd.xlane.f32.xlu1 %v652_v16  ;;  %v642_v32 = vmul.f32 %v1233_v20, %v638_v31 }
 0x397   : > { %650 = vadd.xlane.f32.xlu1 %v649_v17 }
 0x3a0   : > { %675 = vperm.xlu0 %1212, %v1231_v19  }
 0x3a8   : > { %685 = vperm.xlu1 %1213, %v1233_v20  }
 0x417   : > { %v648_v26 = vpop.xlane.xlu0 %647 }
 0x418   : > { %v656_v28 = vadd.f32 %v648_v26, %v640_v25  ;;  %v645_v29 = vpop.xlane.xlu1 %644 }
 0x419   : > { %v655_v30 = vadd.f32 %v645_v29, %v639_v27 }
 0x41a   : > { %661 = vst.msk [vmem:[%s1735_s10 + $0x8] sm:$0xff] %vm659_vm5, %v656_v28 }
 0x41b   : > { %660 = vst.msk [vmem:[%s1735_s10] sm:$0xff] %vm659_vm5, %v655_v30 }
 0x41f   : > { %v676_v40 = vpop.permute.xlu0 %675 }
 0x420   : > { %v654_v33 = vpop.xlane.xlu1 %653  ;;  %v689_v42 = vmul.f32 %v676_v40, %v665_v39 }
 0x421   : > { %v658_v35 = vadd.f32 %v654_v33, %v642_v32 }
 0x423   : > { %663 = vst.msk [vmem:[%s1735_s10 + $0x18] sm:$0xff] %vm659_vm5, %v658_v35 }
 0x424   : > { %v651_v37 = vpop.xlane.xlu1 %650 }
 0x425   : > { %v657_v38 = vadd.f32 %v651_v37, %v641_v36 }
 0x427   : > { %662 = vst.msk [vmem:[%s1735_s10 + $0x10] sm:$0xff] %vm659_vm5, %v657_v38  ;;  %s1320_s10 = scalar_lea.vmem %s1847_s13, 512 }
 0x428   : > { %v686_v49 = vpop.permute.xlu1 %685  ;;  %p1321_p4 = scmp.ne.s32.totalorder %s1847_s13, %s1320_s10  ;;  %p1328_p5 = scmp.lt.s32.totalorder %s1326_s16, %s1320_s10 }
 0x429   : > { %v691_v51 = vmul.f32 %v686_v49, %v667_v48 }
 0x42a   : > { %p1322_p13 = pnand %p1321_p4, %p1963_p6  ;;  %p1329_p8 = por %p1328_p5, %p1327_p11 }
 0x42c   : > { %p1323_p10 = pneg %p1322_p13 }
 0x42e   : > { %p1330_p12 = pnand %p1329_p8, %p1323_p10 }
 0x45e   : > { %v1067_v44 = vpop.f32.mrb[2].mxu0 }
 0x45f   : > { %v790_v45 = vadd.f32 %v1067_v44, %v689_v42  ;;  %v770_v46 = vpop.f32.mrb[3].mxu0 }
 0x460   : > { %v789_v47 = vadd.f32 %v770_v46, %v688_v43 }
 0x461   : > { %794 = vst.msk [vmem:[%s1737_s20 + $0x8] sm:$0xff] %vm378_vm3, %v790_v45 }
 0x462   : > { %793 = vst.msk [vmem:[%s1737_s20] sm:$0xff] %vm378_vm3, %v789_v47 }
 0x465   : > { %v1070_v53 = vpop.f32.mrb[4].mxu1 }
 0x466   : > { %v792_v54 = vadd.f32 %v1070_v53, %v691_v51  ;;  %v780_v55 = vpop.f32.mrb[5].mxu1 }
 0x467   : > { %v791_v56 = vadd.f32 %v780_v55, %v690_v52 }
 0x468   : > { %796 = vst.msk [vmem:[%s1737_s20 + $0x18] sm:$0xff] %vm378_vm3, %v792_v54 }
 0x469   : > { %795 = vst.msk [vmem:[%s1737_s20 + $0x10] sm:$0xff] %vm378_vm3, %v791_v56 }
 0x46a   : > { %1333 = shalt.err (!%p1330_p12)
}
 0x46b   : > { %s1334_s27 = scalar_lea.hbm %s1845_s19, 512  ;;  %s1338_s3 = scalar_lea.hbm %s1962_s8, 1024 }
 0x46c   : > { %p1335_p2 = scmp.ne.s32.totalorder %s1845_s19, %s1334_s27  ;;  %p1339_p0 = scmp.lt.u32.totalorder %s1845_s19, %s1962_s8 }
 0x46d   : > { %p1340_p3 = scmp.lt.u32.totalorder %s1338_s3, %s1334_s27  ;;  %p1342_p4 = scmp.lt.u32.totalorder %s1334_s27, %s1845_s19 }
 0x46e   : > { %p1336_p9 = pnand %p1335_p2, %p1963_p6 }
 0x46f   : > { %p1341_p1 = por %p1340_p3, %p1339_p0 }
 0x470   : > { %p1337_p7 = pneg %p1336_p9 }
 0x471   : > { %p1343_p13 = por %p1342_p4, %p1341_p1 }
 0x473   : > { %p1344_p10 = pnand %p1343_p13, %p1337_p7 }
 0x475   : > { %1347 = shalt.err (!%p1344_p10)
}
 0x476   : > { %s1460_s14 = smov 128   ;;  %s1461_s9 = smov 8  }
 0x477   : > { %1089 = dma.vmem_to_hbm [thread:$0]  (%p1963_p6), %s1847_s13, 512, %s1845_s19, %s1855_s28, %s1460_s14, %s1460_s14, %s1461_s9  }
 0x478 PF: > { %s1964_s17 = sld [smem:[#allocation12_spill]]  ;;  %s1965_s11 = sld [smem:[#allocation16_spill]] }
 0x479   : > { %p1111_p11 = scmp.ge.s32.totalorder %s1446_s7, 2 }
 0x47e   : > { %s862_s10 = sand.u32 1, %s1964_s17   ;;  %p1966_p5 = scmp.ne.s32.totalorder %s1965_s11, 0 }
 0x47f   : > { %s863_s15 = scalar_lea.sflag [#allocation4], %s862_s10 }
 0x480   : > { %p1103_p8 = pnand %p1111_p11, %p1966_p5 }
 0x482   : > { %1401 = dma.done.wait (!%p1103_p8), %s863_s15, 512  }
 0x483   : > { %1403 = vsyncadd (!%p1103_p8), %s863_s15, 4294966784  ;;  %s24_s7 = sadd.s32 1, %s1446_s7   ;;  %s1967_s13 = smov %s1666_s21 }
 0x484   : > { %p21_p12 = scmp.ge.s32.totalorder %s24_s7, 6   ;;  %s1968_s27 = sld [smem:[#allocation14_spill]] }
 0x485   : > { %s1969_s19 = sld [smem:[#allocation17_spill]]  ;;  %s1970_s21 = smov %s1410_s22 }
 0x486   : > { %s1971_s22 = smov %s1414_s23  ;;  %s1972_s23 = smov %s1663_s6 }
 0x487   : > { %s1973_s24 = smov %s1422_s25  ;;  %s1974_s25 = smov %s1426_s26 }
 0x488   : > { %s1975_s26 = smov %s1967_s13  ;;  %s1976_s28 = smov %s1442_s30 }
 0x489   : > { %s1977_s29 = smov %s1980_s12  ;;  %23 = sbr.rel (!%p21_p12) target bundleno = 15 (0xf), region = 117 }
 0x48b   : > { %s1978_s30 = smov %s1969_s19 }
 0x490   :  { %868 = vsyncpa [#allocation3], 1 }
 0x491   :  { %870 = vsyncpa [#allocation3 + $0x1], 1 }
 0x492   :  { %871 = vsyncpa [#allocation6], 1 }
 0x493   :  { %872 = vsyncpa [#allocation4], 1 }
 0x494   :  { %874 = vsyncpa [#allocation4 + $0x1], 1 }

</bundles_post_ra>
